<compile_context>
chip_gen: v7x
topology: tpu7x:2x2x1
jax: 0.10.0
libtpu: 0.0.40
codegen_flags: <defaults>
</compile_context>

<pallas_src>
import functools

import jax
import jax.numpy as jnp
import numpy as np
from jax import lax
from jax.experimental import pallas as pl
from jax.experimental.pallas import tpu as pltpu

_LANES = 128


def _sublane_multiple(dtype):
    # f32 -> 8, bf16 -> 16, int8/fp8 -> 32 (sublane-packed tiling).
    return max(8, 32 // jnp.dtype(dtype).itemsize)


def _vmem_capacity_bytes():
    try:
        cap = getattr(pltpu.get_tpu_info(), "vmem_capacity_bytes", None)
        if cap:
            return int(cap)
    except Exception:
        pass
    return 64 << 20  # conservative default (v7x per-TensorCore VMEM)


def _dice_kernel(pred_ref, target_ref, inter_ref, sum_ref, *,
                 rows, row_tile, acc_rows, k_per_core, needs_mask):
    """One (core, k) grid step.

    pred_ref/target_ref: (N, row_tile, 128) input tiles.
    inter_ref/sum_ref:   (N, acc_rows, 128) f32 per-core resident output
                         accumulators: sum(pred*target) and sum(pred)+sum(target).
    """
    c = pl.program_id(0)
    k = pl.program_id(1)

    @pl.when(k == 0)
    def _init():
        inter_ref[...] = jnp.zeros_like(inter_ref)
        sum_ref[...] = jnp.zeros_like(sum_ref)

    # Global row of the first row of this step (UNclamped; overhang steps past
    # the real data are fully masked below).
    block_row0 = (c * k_per_core + k) * row_tile

    n_full = row_tile // acc_rows
    rem = row_tile - n_full * acc_rows

    def add_chunk(start, size, masked):
        p = pred_ref[:, pl.ds(start, size), :].astype(jnp.float32)
        t = target_ref[:, pl.ds(start, size), :].astype(jnp.float32)
        if masked:
            rid = lax.broadcasted_iota(jnp.int32, p.shape, dimension=1)
            valid = (block_row0 + start + rid) < rows
            p = jnp.where(valid, p, 0.0)
            t = jnp.where(valid, t, 0.0)
        # Pure-VALU elementwise accumulate; sublane/lane collapse deferred to
        # the tiny wrapper epilogue.
        inter_ref[:, pl.ds(0, size), :] += p * t
        sum_ref[:, pl.ds(0, size), :] += p + t

    def sweep(masked):
        if n_full == 1 and rem == 0:
            add_chunk(0, acc_rows, masked)          # common small-block case
        else:
            if n_full > 0:
                def body(i, carry):
                    add_chunk(pl.multiple_of(i * acc_rows, acc_rows),
                              acc_rows, masked)
                    return carry
                lax.fori_loop(0, n_full, body, 0)
            if rem:
                add_chunk(n_full * acc_rows, rem, masked)

    if needs_mask:
        not_ragged = block_row0 + row_tile <= rows

        @pl.when(not_ragged)
        def _fast():
            sweep(masked=False)

        @pl.when(jnp.logical_not(not_ragged))
        def _boundary():
            sweep(masked=True)
    else:
        sweep(masked=False)


@functools.partial(jax.jit, static_argnames=("block_bytes", "cores", "acc_rows"))
def dice_loss(pred, target, *, block_bytes=None, cores=None, acc_rows=None):
    """DiceLoss.forward: 1 - mean_n[(2*sum(p*t)+1)/(sum(p)+sum(t)+1)]."""
    assert pred.shape == target.shape, (pred.shape, target.shape)
    n = pred.shape[0]
    f = int(np.prod(pred.shape[1:]))

    r = -(-f // _LANES)
    f128 = r * _LANES

    pred2 = pred.reshape(n, f)
    target2 = target.reshape(n, f)
    if f128 != f:
        # TODO(synk): this pad materializes an extra HBM round trip for
        # F % 128 != 0; zero padding is sum-neutral so numerics are unchanged.
        pad = ((0, 0), (0, f128 - f))
        pred2 = jnp.pad(pred2, pad)
        target2 = jnp.pad(target2, pad)
    pred3 = pred2.reshape(n, r, _LANES)       # free: row-major split of last dim
    target3 = target2.reshape(n, r, _LANES)

    p_item = pred3.dtype.itemsize
    t_item = target3.dtype.itemsize
    sub_mult = max(_sublane_multiple(pred3.dtype),
                   _sublane_multiple(target3.dtype))

    # --- generation-aware block sizing (kernel is pure HBM roofline) ---------
    vmem_cap = _vmem_capacity_bytes()
    if block_bytes is None:
        # ~8 MiB/input block on 128 MiB-VMEM parts (v5e/v6e), ~4 MiB on 64 MiB
        # parts (v7x); amortizes the ~0.35us per-grid-step overhead while
        # leaving double-buffering headroom.
        block_bytes = (8 << 20) if vmem_cap >= (96 << 20) else (4 << 20)
    per_row_bytes = n * _LANES * (p_item + t_item)
    rows_budget = max(sub_mult, (2 * block_bytes) // per_row_bytes)
    if r <= rows_budget:
        row_tile = r                           # single block (full extent ok)
    else:
        row_tile = max(sub_mult, (rows_budget // sub_mult) * sub_mult)

    k_total = -(-r // row_tile)
    if cores is None:
        # Leading "parallel" axis: splits the sweep across both TensorCores on
        # v7x / megacore parts; harmless sequential iteration on 1-TC chips.
        cores = 2 if k_total >= 2 else 1
    cores = max(1, min(int(cores), k_total))
    k_per_core = -(-k_total // cores)
    needs_mask = (cores * k_per_core * row_tile) != r

    # f32 accumulator tile (also the per-core output); ~512 KiB total so the
    # fori sub-chunk loop keeps live ranges bounded.
    if acc_rows is None:
        acc_rows = (512 << 10) // (n * _LANES * 4 * 2)
    acc_rows = max(sub_mult, (int(acc_rows) // sub_mult) * sub_mult)
    acc_rows = min(acc_rows, row_tile)

    last_block = k_total - 1

    def in_index(c, k):
        # Clamp overhang steps to the last real block; their rows are >= r so
        # the in-kernel mask zeroes their contribution.
        return (0, jnp.minimum(c * k_per_core + k, last_block), 0)

    def out_index(c, k):
        return (c, 0, 0, 0)

    kernel = functools.partial(
        _dice_kernel, rows=r, row_tile=row_tile, acc_rows=acc_rows,
        k_per_core=k_per_core, needs_mask=needs_mask)

    out_sds = jax.ShapeDtypeStruct((cores, n, acc_rows, _LANES), jnp.float32)
    out_bytes = int(np.prod(out_sds.shape)) * 4

    in_block_bytes = n * row_tile * _LANES * (p_item + t_item)
    acc_block_bytes = 2 * n * acc_rows * _LANES * 4
    vmem_needed = 2 * in_block_bytes + 2 * acc_block_bytes + (2 << 20)
    vmem_limit = min(max(vmem_needed * 5 // 4, 16 << 20), vmem_cap * 6 // 10)
    vmem_limit = max(vmem_limit, vmem_needed)

    inter_part, sum_part = pl.pallas_call(
        kernel,
        out_shape=(out_sds, out_sds),
        grid_spec=pltpu.PrefetchScalarGridSpec(
            num_scalar_prefetch=0,
            grid=(cores, k_per_core),
            in_specs=[
                pl.BlockSpec((n, row_tile, _LANES), in_index),
                pl.BlockSpec((n, row_tile, _LANES), in_index),
            ],
            out_specs=[
                pl.BlockSpec((None, n, acc_rows, _LANES), out_index),
                pl.BlockSpec((None, n, acc_rows, _LANES), out_index),
            ],
        ),
        compiler_params=pltpu.CompilerParams(
            dimension_semantics=("parallel", "arbitrary"),
            vmem_limit_bytes=int(vmem_limit),
        ),
        cost_estimate=pl.CostEstimate(
            flops=4 * n * r * _LANES,
            transcendentals=0,
            bytes_accessed=n * r * _LANES * (p_item + t_item) + 2 * out_bytes,
        ),
    )(pred3, target3)

    # Tiny epilogue on the per-core lane-dense partials (a few KiB): final
    # cross-lane/sublane reduce + dice formula.
    smooth = jnp.float32(1.0)
    inter = jnp.sum(inter_part, axis=(0, 2, 3))     # (N,) sum(pred * target)
    both = jnp.sum(sum_part, axis=(0, 2, 3))        # (N,) sum(pred) + sum(target)
    dice = (2.0 * inter + smooth) / (both + smooth)
    return 1.0 - jnp.sum(dice) / jnp.float32(n)


def _dice_loss_ref(pred, target):
    smooth = 1.0
    n = pred.shape[0]
    p = pred.reshape(n, -1).astype(jnp.float32)
    t = target.reshape(n, -1).astype(jnp.float32)
    inter = (p * t).sum(1)
    dice = (2.0 * inter + smooth) / (p.sum(1) + t.sum(1) + smooth)
    return 1.0 - dice.sum() / n


if __name__ == "__main__":
    key = jax.random.PRNGKey(0)
    k1, k2, k3, k4, k5, k6 = jax.random.split(key, 6)

    # 1) Primary check: module-consistent small NCHW shape, f32 pred/target.
    pred = jax.random.uniform(k1, (2, 4, 16, 16), dtype=jnp.float32)
    target = (jax.random.uniform(k2, (2, 4, 16, 16)) > 0.5).astype(jnp.float32)
    loss = dice_loss(pred, target)
    jax.block_until_ready(loss)
    np.testing.assert_allclose(np.asarray(loss),
                               np.asarray(_dice_loss_ref(pred, target)),
                               rtol=1e-5, atol=1e-5)

    # 2) bf16 target (exact for binary masks, halves its HBM traffic) with
    #    forced small blocks: exercises the multi-block grid, the 2-core
    #    "parallel" split, and the ragged/overhang mask path.
    pred_b = jax.random.uniform(k3, (2, 5, 32, 32), dtype=jnp.float32)
    target_b = (jax.random.uniform(k4, (2, 5, 32, 32)) > 0.5).astype(jnp.bfloat16)
    loss_b = dice_loss(pred_b, target_b, block_bytes=16 << 10)
    jax.block_until_ready(loss_b)
    np.testing.assert_allclose(np.asarray(loss_b),
                               np.asarray(_dice_loss_ref(pred_b, target_b)),
                               rtol=1e-5, atol=1e-5)

    # 3) Non-128-aligned F (pad fallback) + small accumulator: exercises the
    #    fori sub-chunk loop and masked boundary steps.
    pred_c = jax.random.uniform(k5, (2, 3, 40, 40), dtype=jnp.float32)
    target_c = (jax.random.uniform(k6, (2, 3, 40, 40)) > 0.5).astype(jnp.float32)
    loss_c = dice_loss(pred_c, target_c, block_bytes=16 << 10, acc_rows=8)
    jax.block_until_ready(loss_c)
    np.testing.assert_allclose(np.asarray(loss_c),
                               np.asarray(_dice_loss_ref(pred_c, target_c)),
                               rtol=1e-5, atol=1e-5)

    print("KERNEL_OK")
</pallas_src>

<mosaic_0001>
module attributes {stable_mosaic.version = 11 : i64} {
  func.func @_dice_kernel(%arg0: i32, %arg1: i32, %arg2: memref<2x8x128xf32, #tpu.memory_space<vmem>>, %arg3: memref<2x8x128xf32, #tpu.memory_space<vmem>>, %arg4: memref<1x2x8x128xf32, #tpu.memory_space<vmem>>, %arg5: memref<1x2x8x128xf32, #tpu.memory_space<vmem>>) attributes {dimension_semantics = [#tpu.dimension_semantics<parallel>, #tpu.dimension_semantics<arbitrary>], iteration_bounds = array<i64: 1, 1>, scalar_prefetch = 0 : i64, scratch_operands = 0 : i64, tpu.core_type = #tpu.core_type<tc>, window_params = [{transform_indices = @transform_0, window_bounds = array<i64: 2, 8, 128>}, {transform_indices = @transform_1, window_bounds = array<i64: 2, 8, 128>}, {transform_indices = @transform_2, window_bounds = array<i64: 1, 2, 8, 128>}, {transform_indices = @transform_3, window_bounds = array<i64: 1, 2, 8, 128>}]} {
    %c0_i32 = arith.constant 0 : i32
    %0 = arith.cmpi eq, %arg1, %c0_i32 : i32
    %1 = arith.extui %0 : i1 to i32
    %c0_i32_0 = arith.constant 0 : i32
    %2 = arith.cmpi ne, %1, %c0_i32_0 : i32
    scf.if %2 {
      %cst = arith.constant 0.000000e+00 : f32
      %19 = vector.broadcast %cst : f32 to vector<2x8x128xf32>
      %c0_22 = arith.constant 0 : index
      %c0_23 = arith.constant 0 : index
      %c0_24 = arith.constant 0 : index
      %c0_25 = arith.constant 0 : index
      %20 = vector.load %arg4[%c0_22, %c0_23, %c0_24, %c0_25] : memref<1x2x8x128xf32, #tpu.memory_space<vmem>>, vector<1x2x8x128xf32>
      %21 = vector.shape_cast %20 : vector<1x2x8x128xf32> to vector<2x8x128xf32>
      %22 = vector.shape_cast %19 : vector<2x8x128xf32> to vector<1x2x8x128xf32>
      tpu.vector_store %arg4[%c0_22, %c0_23, %c0_24, %c0_25], %22 {strides = array<i32>} : memref<1x2x8x128xf32, #tpu.memory_space<vmem>>, vector<1x2x8x128xf32>,
      %cst_26 = arith.constant 0.000000e+00 : f32
      %23 = vector.broadcast %cst_26 : f32 to vector<2x8x128xf32>
      %c0_27 = arith.constant 0 : index
      %c0_28 = arith.constant 0 : index
      %c0_29 = arith.constant 0 : index
      %c0_30 = arith.constant 0 : index
      %24 = vector.load %arg5[%c0_27, %c0_28, %c0_29, %c0_30] : memref<1x2x8x128xf32, #tpu.memory_space<vmem>>, vector<1x2x8x128xf32>
      %25 = vector.shape_cast %24 : vector<1x2x8x128xf32> to vector<2x8x128xf32>
      %26 = vector.shape_cast %23 : vector<2x8x128xf32> to vector<1x2x8x128xf32>
      tpu.vector_store %arg5[%c0_27, %c0_28, %c0_29, %c0_30], %26 {strides = array<i32>} : memref<1x2x8x128xf32, #tpu.memory_space<vmem>>, vector<1x2x8x128xf32>,
    } else {
    }
    %c0 = arith.constant 0 : index
    %c0_1 = arith.constant 0 : index
    %c0_2 = arith.constant 0 : index
    %3 = vector.load %arg2[%c0, %c0_1, %c0_2] : memref<2x8x128xf32, #tpu.memory_space<vmem>>, vector<2x8x128xf32>
    %c0_3 = arith.constant 0 : index
    %c0_4 = arith.constant 0 : index
    %c0_5 = arith.constant 0 : index
    %4 = vector.load %arg3[%c0_3, %c0_4, %c0_5] : memref<2x8x128xf32, #tpu.memory_space<vmem>>, vector<2x8x128xf32>
    %c0_6 = arith.constant 0 : index
    %c0_7 = arith.constant 0 : index
    %c0_8 = arith.constant 0 : index
    %c0_9 = arith.constant 0 : index
    %5 = vector.load %arg4[%c0_6, %c0_7, %c0_8, %c0_9] : memref<1x2x8x128xf32, #tpu.memory_space<vmem>>, vector<1x2x8x128xf32>
    %6 = vector.shape_cast %5 : vector<1x2x8x128xf32> to vector<2x8x128xf32>
    %7 = arith.mulf %3, %4 : vector<2x8x128xf32>
    %8 = arith.addf %6, %7 : vector<2x8x128xf32>
    %c0_10 = arith.constant 0 : index
    %c0_11 = arith.constant 0 : index
    %c0_12 = arith.constant 0 : index
    %c0_13 = arith.constant 0 : index
    %9 = vector.load %arg4[%c0_10, %c0_11, %c0_12, %c0_13] : memref<1x2x8x128xf32, #tpu.memory_space<vmem>>, vector<1x2x8x128xf32>
    %10 = vector.shape_cast %9 : vector<1x2x8x128xf32> to vector<2x8x128xf32>
    %11 = vector.shape_cast %8 : vector<2x8x128xf32> to vector<1x2x8x128xf32>
    tpu.vector_store %arg4[%c0_10, %c0_11, %c0_12, %c0_13], %11 {strides = array<i32>} : memref<1x2x8x128xf32, #tpu.memory_space<vmem>>, vector<1x2x8x128xf32>,
    %c0_14 = arith.constant 0 : index
    %c0_15 = arith.constant 0 : index
    %c0_16 = arith.constant 0 : index
    %c0_17 = arith.constant 0 : index
    %12 = vector.load %arg5[%c0_14, %c0_15, %c0_16, %c0_17] : memref<1x2x8x128xf32, #tpu.memory_space<vmem>>, vector<1x2x8x128xf32>
    %13 = vector.shape_cast %12 : vector<1x2x8x128xf32> to vector<2x8x128xf32>
    %14 = arith.addf %3, %4 : vector<2x8x128xf32>
    %15 = arith.addf %13, %14 : vector<2x8x128xf32>
    %c0_18 = arith.constant 0 : index
    %c0_19 = arith.constant 0 : index
    %c0_20 = arith.constant 0 : index
    %c0_21 = arith.constant 0 : index
    %16 = vector.load %arg5[%c0_18, %c0_19, %c0_20, %c0_21] : memref<1x2x8x128xf32, #tpu.memory_space<vmem>>, vector<1x2x8x128xf32>
    %17 = vector.shape_cast %16 : vector<1x2x8x128xf32> to vector<2x8x128xf32>
    %18 = vector.shape_cast %15 : vector<2x8x128xf32> to vector<1x2x8x128xf32>
    tpu.vector_store %arg5[%c0_18, %c0_19, %c0_20, %c0_21], %18 {strides = array<i32>} : memref<1x2x8x128xf32, #tpu.memory_space<vmem>>, vector<1x2x8x128xf32>,
    return
  }
  func.func @transform_0(%arg0: i32, %arg1: i32) -> (i32, i32, i32) {
    %c1_i32 = arith.constant 1 : i32
    %0 = arith.muli %arg0, %c1_i32 : i32
    %1 = arith.addi %0, %arg1 : i32
    %c0_i32 = arith.constant 0 : i32
    %2 = arith.minsi %1, %c0_i32 : i32
    %c0_i32_0 = arith.constant 0 : i32
    %c0_i32_1 = arith.constant 0 : i32
    %c0_i32_2 = arith.constant 0 : i32
    return %c0_i32_0, %2, %c0_i32_1 : i32, i32, i32
  }
  func.func @transform_1(%arg0: i32, %arg1: i32) -> (i32, i32, i32) {
    %c1_i32 = arith.constant 1 : i32
    %0 = arith.muli %arg0, %c1_i32 : i32
    %1 = arith.addi %0, %arg1 : i32
    %c0_i32 = arith.constant 0 : i32
    %2 = arith.minsi %1, %c0_i32 : i32
    %c0_i32_0 = arith.constant 0 : i32
    %c0_i32_1 = arith.constant 0 : i32
    %c0_i32_2 = arith.constant 0 : i32
    return %c0_i32_0, %2, %c0_i32_1 : i32, i32, i32
  }
  func.func @transform_2(%arg0: i32, %arg1: i32) -> (i32, i32, i32, i32) {
    %c0_i32 = arith.constant 0 : i32
    %c0_i32_0 = arith.constant 0 : i32
    %c0_i32_1 = arith.constant 0 : i32
    %c0_i32_2 = arith.constant 0 : i32
    return %arg0, %c0_i32, %c0_i32_0, %c0_i32_1 : i32, i32, i32, i32
  }
  func.func @transform_3(%arg0: i32, %arg1: i32) -> (i32, i32, i32, i32) {
    %c0_i32 = arith.constant 0 : i32
    %c0_i32_0 = arith.constant 0 : i32
    %c0_i32_1 = arith.constant 0 : i32
    %c0_i32_2 = arith.constant 0 : i32
    return %arg0, %c0_i32, %c0_i32_0, %c0_i32_1 : i32, i32, i32, i32
  }
}

</mosaic_0001>

<bundles_post_ra>
// kernel: dice_loss.1
= control target key start
LH: loop header
LB: loop body
LE: loop exit
PB: predicated region body
PF: predicated region fallthrough
CT: control target
= control target key end

     0   :  { %s160_s0 = inlined_call_operand.vmem [shape: f32[2,8,128], index: 0, kind: input, shape index: {}]   ;;  %s161_s1 = inlined_call_operand.vmem [shape: f32[2,8,128], index: 1, kind: input, shape index: {}]   ;;  %s162_s2 = inlined_call_operand.vmem [shape: f32[1,2,8,128], index: 2, kind: output, shape index: {0}]   ;;  %s163_s3 = inlined_call_operand.vmem [shape: f32[1,2,8,128], index: 3, kind: output, shape index: {1}]  }
   0x1   :  { %v75_v0 = vld [vmem:[%s160_s0] sm:$0xff]  ;;  %v76_v2 = vld [vmem:[%s160_s0 + $0x8] sm:$0xff] }
   0x2   :  { %v77_v1 = vld [vmem:[%s161_s1] sm:$0xff]  ;;  %v78_v4 = vld [vmem:[%s161_s1 + $0x8] sm:$0xff] }
   0x3   :  { %v81_v3 = vmul.f32 %v77_v1, %v75_v0  ;;  %v89_v5 = vadd.f32 %v77_v1, %v75_v0  ;;  %v82_v6 = vmul.f32 %v78_v4, %v76_v2  ;;  %v90_v7 = vadd.f32 %v78_v4, %v76_v2 }
   0x5   :  { %85 = vst [vmem:[%s162_s2] sm:$0xff] %v81_v3  ;;  %93 = vst [vmem:[%s163_s3] sm:$0xff] %v89_v5 }
   0x6   :  { %86 = vst [vmem:[%s162_s2 + $0x8] sm:$0xff] %v82_v6  ;;  %94 = vst [vmem:[%s163_s3 + $0x8] sm:$0xff] %v90_v7 }

</bundles_post_ra>
